<compile_context>
chip_gen: v5e
topology: v5e:2x2
jax: 0.10.0
libtpu: 0.0.40
codegen_flags: <defaults>
</compile_context>

<pallas_src>
import functools

import jax
import jax.numpy as jnp
from jax.experimental import pallas as pl
from jax.experimental.pallas import tpu as pltpu

_LANES = 128
_NEG_BIG = -1e30  # "minus infinity" that stays NaN-free under exp()


def _cosface_kernel(cos_ref, lab_ref, out_ref, l_sc, t_sc, *, s, m, num_classes):
    # cos_ref: (b_tile, c_tile) input dtype   -- cosine logits tile
    # lab_ref: (b_tile, 1) int32              -- class index per row (resident)
    # out_ref: (b_tile, 1) float32            -- per-sample loss (finalize only)
    # l_sc/t_sc: (b_tile, 128) float32        -- per-lane exp-sum / target-logit
    c_idx = pl.program_id(1)
    n_c = pl.num_programs(1)

    bt = lab_ref.shape[0]
    ct = cos_ref.shape[1]
    n_chunks = ct // _LANES

    @pl.when(c_idx == 0)
    def _init():
        l_sc[...] = jnp.zeros_like(l_sc)
        t_sc[...] = jnp.zeros_like(t_sc)

    lab = lab_ref[...]                                           # (bt, 1) int32
    lane = jax.lax.broadcasted_iota(jnp.int32, (bt, _LANES), 1)  # hoisted
    tile_base = c_idx * ct

    def fold(masked):
        tgt0 = lab - tile_base            # (bt, 1): target lane offset in tile
        lim0 = num_classes - tile_base    # scalar: valid-column limit in tile

        def body(i, carry):
            l_acc, t_acc = carry
            off = pl.multiple_of(i * _LANES, _LANES)
            cos = cos_ref[:, pl.ds(off, _LANES)].astype(jnp.float32)
            is_target = lane == (tgt0 - off)                     # (bt, 128)
            logits = s * jnp.where(is_target, cos - m, cos)
            if masked:
                logits = jnp.where(lane < (lim0 - off), logits, _NEG_BIG)
            # Fixed shift: logits <= s  =>  exp(logits - s) <= 1, never overflows.
            l_acc = l_acc + jnp.exp(logits - s)
            t_acc = t_acc + jnp.where(is_target, logits, 0.0)
            return l_acc, t_acc

        zeros = jnp.zeros((bt, _LANES), jnp.float32)
        unroll = True if n_chunks <= 8 else 8
        l_acc, t_acc = jax.lax.fori_loop(0, n_chunks, body, (zeros, zeros),
                                         unroll=unroll)
        l_sc[...] += l_acc
        t_sc[...] += t_acc

    if num_classes % ct == 0:
        # No padded columns anywhere: never pay for the tail mask.
        fold(masked=False)
    else:
        @pl.when(c_idx < n_c - 1)
        def _bulk():
            fold(masked=False)

        @pl.when(c_idx == n_c - 1)
        def _tail():
            fold(masked=True)

    # Finalize: one cross-lane reduce per B tile, one log, one store.
    @pl.when(c_idx == n_c - 1)
    def _finalize():
        l_row = jnp.sum(l_sc[...], axis=-1, keepdims=True)       # (bt, 1)
        t_row = jnp.sum(t_sc[...], axis=-1, keepdims=True)       # (bt, 1)
        out_ref[...] = (s + jnp.log(l_row)) - t_row              # per-sample loss


def cosface_loss(cosine, label, *, s=30.0, m=0.3, b_tile=None, c_tile=None):
    """cosine: (B, C) float (f32 or bf16), label: (B,) int -> scalar f32 loss."""
    B, C = cosine.shape
    label2d = label.reshape(B, 1).astype(jnp.int32)

    if b_tile is None:
        # <=64 rows/tile keeps the (b_tile,128) accumulators register-sized;
        # ~B/2 rounded up to 8 sublanes keeps >=2 batch tiles for v7x's 2 TCs.
        half = pl.cdiv(pl.cdiv(B, 2), 8) * 8
        b_tile = max(8, min(64, half))
    if c_tile is None:
        # Large class blocks amortize per-grid-step overhead; 64x16384 f32 is
        # 4 MiB/buffer (8 MiB double-buffered) -- fits v7x's 64 MiB VMEM.
        c_tile = min(16384, pl.cdiv(C, _LANES) * _LANES)
    assert b_tile % 8 == 0, "b_tile must be a multiple of 8 sublanes"
    assert c_tile % _LANES == 0, "c_tile must be a multiple of 128 lanes"

    grid = (pl.cdiv(B, b_tile), pl.cdiv(C, c_tile))

    per_sample = pl.pallas_call(
        functools.partial(_cosface_kernel, s=float(s), m=float(m), num_classes=C),
        out_shape=jax.ShapeDtypeStruct((B, 1), jnp.float32),
        grid_spec=pltpu.PrefetchScalarGridSpec(
            num_scalar_prefetch=0,
            grid=grid,
            in_specs=[
                # cosine: streamed in its native dtype, double-buffered by Pallas.
                pl.BlockSpec((b_tile, c_tile), lambda b, c: (b, c)),
                # labels: constant block index along c -> stays resident across
                # the whole class sweep (one tiny DMA per B tile).
                pl.BlockSpec((b_tile, 1), lambda b, c: (b, 0)),
            ],
            out_specs=pl.BlockSpec((b_tile, 1), lambda b, c: (b, 0)),
            scratch_shapes=[pltpu.VMEM((b_tile, _LANES), jnp.float32)] * 2,
        ),
        compiler_params=pltpu.CompilerParams(
            dimension_semantics=("parallel", "arbitrary"),
            vmem_limit_bytes=64 * 1024 * 1024,
        ),
    )(cosine, label2d)

    # Batch mean (1/B scale) in the wrapper, not in the kernel.
    return jnp.mean(per_sample)


def _reference(cosine, label, s, m):
    """Pure-JAX reference matching the PyTorch module."""
    cos = cosine.astype(jnp.float32)
    one_hot = jax.nn.one_hot(label, cos.shape[1], dtype=jnp.float32)
    logits = s * (cos - m * one_hot)
    logprobs = jax.nn.log_softmax(logits, axis=-1)
    return jnp.mean(-jnp.sum(logprobs * one_hot, axis=-1))


if __name__ == "__main__":
    # Small shapes, chosen to exercise multi-tile B, multi-tile C and the
    # masked tail C tile (300 % 128 != 0).
    B, C = 16, 300          # batch, out_features
    s, m = 30.0, 0.3

    key = jax.random.PRNGKey(0)
    k1, k2 = jax.random.split(key)
    cosine = jax.random.uniform(k1, (B, C), jnp.float32, minval=-1.0, maxval=1.0)
    label = jax.random.randint(k2, (B,), 0, C, dtype=jnp.int32)

    ref = _reference(cosine, label, s, m)

    # Explicit small tiles: multi-tile B and C, tail-masked last C tile.
    loss = cosface_loss(cosine, label, s=s, m=m, b_tile=8, c_tile=128)
    loss = jax.block_until_ready(loss)
    if not bool(jnp.allclose(loss, ref, rtol=1e-3, atol=1e-3)):
        raise AssertionError(f"mismatch (explicit tiles): kernel={float(loss)} ref={float(ref)}")

    # Default tile selection path (single tail-masked C tile, 2 batch tiles).
    loss_d = cosface_loss(cosine, label, s=s, m=m)
    loss_d = jax.block_until_ready(loss_d)
    if not bool(jnp.allclose(loss_d, ref, rtol=1e-3, atol=1e-3)):
        raise AssertionError(f"mismatch (default tiles): kernel={float(loss_d)} ref={float(ref)}")

    print("KERNEL_OK")
</pallas_src>

<mosaic_0001>
module attributes {stable_mosaic.version = 11 : i64} {
  func.func @_cosface_kernel(%arg0: i32, %arg1: i32, %arg2: memref<8x128xf32, #tpu.memory_space<vmem>>, %arg3: memref<8x1xi32, #tpu.memory_space<vmem>>, %arg4: memref<8x1xf32, #tpu.memory_space<vmem>>, %arg5: memref<8x128xf32, #tpu.memory_space<vmem>>, %arg6: memref<8x128xf32, #tpu.memory_space<vmem>>) attributes {dimension_semantics = [#tpu.dimension_semantics<parallel>, #tpu.dimension_semantics<arbitrary>], iteration_bounds = array<i64: 2, 3>, scalar_prefetch = 0 : i64, scratch_operands = 2 : i64, tpu.core_type = #tpu.core_type<tc>, window_params = [{transform_indices = @transform_0, window_bounds = array<i64: 8, 128>}, {transform_indices = @transform_1, window_bounds = array<i64: 8, 1>}, {transform_indices = @transform_2, window_bounds = array<i64: 8, 1>}]} {
    %c0_i32 = arith.constant 0 : i32
    %0 = arith.cmpi eq, %arg1, %c0_i32 : i32
    %1 = arith.extui %0 : i1 to i32
    %c0_i32_0 = arith.constant 0 : i32
    %2 = arith.cmpi ne, %1, %c0_i32_0 : i32
    scf.if %2 {
      %cst = arith.constant 0.000000e+00 : f32
      %15 = vector.broadcast %cst : f32 to vector<8x128xf32>
      %c0_7 = arith.constant 0 : index
      %c0_8 = arith.constant 0 : index
      %16 = vector.load %arg5[%c0_7, %c0_8] : memref<8x128xf32, #tpu.memory_space<vmem>>, vector<8x128xf32>
      tpu.vector_store %arg5[%c0_7, %c0_8], %15 {strides = array<i32>} : memref<8x128xf32, #tpu.memory_space<vmem>>, vector<8x128xf32>,
      %cst_9 = arith.constant 0.000000e+00 : f32
      %17 = vector.broadcast %cst_9 : f32 to vector<8x128xf32>
      %c0_10 = arith.constant 0 : index
      %c0_11 = arith.constant 0 : index
      %18 = vector.load %arg6[%c0_10, %c0_11] : memref<8x128xf32, #tpu.memory_space<vmem>>, vector<8x128xf32>
      tpu.vector_store %arg6[%c0_10, %c0_11], %17 {strides = array<i32>} : memref<8x128xf32, #tpu.memory_space<vmem>>, vector<8x128xf32>,
    } else {
    }
    %c0 = arith.constant 0 : index
    %c0_1 = arith.constant 0 : index
    %3 = vector.load %arg3[%c0, %c0_1] : memref<8x1xi32, #tpu.memory_space<vmem>>, vector<8x1xi32>
    %4 = tpu.iota {dimensions = array<i32: 1>} : vector<8x128xi32>
    %c128_i32 = arith.constant 128 : i32
    %5 = arith.muli %arg1, %c128_i32 : i32
    %c2_i32 = arith.constant 2 : i32
    %6 = arith.cmpi slt, %arg1, %c2_i32 : i32
    %7 = arith.extui %6 : i1 to i32
    %c0_i32_2 = arith.constant 0 : i32
    %8 = arith.cmpi ne, %7, %c0_i32_2 : i32
    scf.if %8 {
      %15 = vector.broadcast %5 : i32 to vector<8x1xi32>
      %16 = arith.subi %3, %15 : vector<8x1xi32>
      %cst = arith.constant 0.000000e+00 : f32
      %17 = vector.broadcast %cst : f32 to vector<8x128xf32>
      %c0_i32_7 = arith.constant 0 : i32
      %c128_i32_8 = arith.constant 128 : i32
      %18 = arith.muli %c0_i32_7, %c128_i32_8 : i32
      %19 = tpu.assume_multiple %18, 128 : i32
      %c0_9 = arith.constant 0 : index
      %20 = arith.index_cast %19 : i32 to index
      %21 = vector.load %arg2[%c0_9, %20] : memref<8x128xf32, #tpu.memory_space<vmem>>, vector<8x128xf32>
      %22 = vector.broadcast %19 : i32 to vector<8x1xi32>
      %23 = arith.subi %16, %22 : vector<8x1xi32>
      %24 = vector.broadcast %23 : vector<8x1xi32> to vector<8x128xi32>
      %25 = arith.cmpi eq, %4, %24 : vector<8x128xi32>
      %cst_10 = arith.constant 3.000000e-01 : f32
      %26 = vector.broadcast %cst_10 : f32 to vector<8x128xf32>
      %27 = arith.subf %21, %26 : vector<8x128xf32>
      %28 = arith.select %25, %27, %21 : vector<8x128xi1>, vector<8x128xf32>
      %cst_11 = arith.constant 3.000000e+01 : f32
      %29 = vector.broadcast %cst_11 : f32 to vector<8x128xf32>
      %30 = arith.mulf %29, %28 : vector<8x128xf32>
      %cst_12 = arith.constant 3.000000e+01 : f32
      %31 = vector.broadcast %cst_12 : f32 to vector<8x128xf32>
      %32 = arith.subf %30, %31 : vector<8x128xf32>
      %33 = math.exp %32 : vector<8x128xf32>
      %34 = arith.addf %17, %33 : vector<8x128xf32>
      %cst_13 = arith.constant 0.000000e+00 : f32
      %35 = vector.broadcast %cst_13 : f32 to vector<8x128xf32>
      %36 = arith.select %25, %30, %35 : vector<8x128xi1>, vector<8x128xf32>
      %37 = arith.addf %17, %36 : vector<8x128xf32>
      %c1_i32 = arith.constant 1 : i32
      %c0_14 = arith.constant 0 : index
      %c0_15 = arith.constant 0 : index
      %38 = vector.load %arg5[%c0_14, %c0_15] : memref<8x128xf32, #tpu.memory_space<vmem>>, vector<8x128xf32>
      %39 = arith.addf %38, %34 : vector<8x128xf32>
      %c0_16 = arith.constant 0 : index
      %c0_17 = arith.constant 0 : index
      %40 = vector.load %arg5[%c0_16, %c0_17] : memref<8x128xf32, #tpu.memory_space<vmem>>, vector<8x128xf32>
      tpu.vector_store %arg5[%c0_16, %c0_17], %39 {strides = array<i32>} : memref<8x128xf32, #tpu.memory_space<vmem>>, vector<8x128xf32>,
      %c0_18 = arith.constant 0 : index
      %c0_19 = arith.constant 0 : index
      %41 = vector.load %arg6[%c0_18, %c0_19] : memref<8x128xf32, #tpu.memory_space<vmem>>, vector<8x128xf32>
      %42 = arith.addf %41, %37 : vector<8x128xf32>
      %c0_20 = arith.constant 0 : index
      %c0_21 = arith.constant 0 : index
      %43 = vector.load %arg6[%c0_20, %c0_21] : memref<8x128xf32, #tpu.memory_space<vmem>>, vector<8x128xf32>
      tpu.vector_store %arg6[%c0_20, %c0_21], %42 {strides = array<i32>} : memref<8x128xf32, #tpu.memory_space<vmem>>, vector<8x128xf32>,
    } else {
    }
    %c2_i32_3 = arith.constant 2 : i32
    %9 = arith.cmpi eq, %arg1, %c2_i32_3 : i32
    %10 = arith.extui %9 : i1 to i32
    %c0_i32_4 = arith.constant 0 : i32
    %11 = arith.cmpi ne, %10, %c0_i32_4 : i32
    scf.if %11 {
      %15 = vector.broadcast %5 : i32 to vector<8x1xi32>
      %16 = arith.subi %3, %15 : vector<8x1xi32>
      %c300_i32 = arith.constant 300 : i32
      %17 = arith.subi %c300_i32, %5 : i32
      %cst = arith.constant 0.000000e+00 : f32
      %18 = vector.broadcast %cst : f32 to vector<8x128xf32>
      %c0_i32_7 = arith.constant 0 : i32
      %c128_i32_8 = arith.constant 128 : i32
      %19 = arith.muli %c0_i32_7, %c128_i32_8 : i32
      %20 = tpu.assume_multiple %19, 128 : i32
      %c0_9 = arith.constant 0 : index
      %21 = arith.index_cast %20 : i32 to index
      %22 = vector.load %arg2[%c0_9, %21] : memref<8x128xf32, #tpu.memory_space<vmem>>, vector<8x128xf32>
      %23 = vector.broadcast %20 : i32 to vector<8x1xi32>
      %24 = arith.subi %16, %23 : vector<8x1xi32>
      %25 = vector.broadcast %24 : vector<8x1xi32> to vector<8x128xi32>
      %26 = arith.cmpi eq, %4, %25 : vector<8x128xi32>
      %cst_10 = arith.constant 3.000000e-01 : f32
      %27 = vector.broadcast %cst_10 : f32 to vector<8x128xf32>
      %28 = arith.subf %22, %27 : vector<8x128xf32>
      %29 = arith.select %26, %28, %22 : vector<8x128xi1>, vector<8x128xf32>
      %cst_11 = arith.constant 3.000000e+01 : f32
      %30 = vector.broadcast %cst_11 : f32 to vector<8x128xf32>
      %31 = arith.mulf %30, %29 : vector<8x128xf32>
      %32 = arith.subi %17, %20 : i32
      %33 = vector.broadcast %32 : i32 to vector<8x128xi32>
      %34 = arith.cmpi slt, %4, %33 : vector<8x128xi32>
      %cst_12 = arith.constant -1.000000e+30 : f32
      %35 = vector.broadcast %cst_12 : f32 to vector<8x128xf32>
      %36 = arith.select %34, %31, %35 : vector<8x128xi1>, vector<8x128xf32>
      %cst_13 = arith.constant 3.000000e+01 : f32
      %37 = vector.broadcast %cst_13 : f32 to vector<8x128xf32>
      %38 = arith.subf %36, %37 : vector<8x128xf32>
      %39 = math.exp %38 : vector<8x128xf32>
      %40 = arith.addf %18, %39 : vector<8x128xf32>
      %cst_14 = arith.constant 0.000000e+00 : f32
      %41 = vector.broadcast %cst_14 : f32 to vector<8x128xf32>
      %42 = arith.select %26, %36, %41 : vector<8x128xi1>, vector<8x128xf32>
      %43 = arith.addf %18, %42 : vector<8x128xf32>
      %c1_i32 = arith.constant 1 : i32
      %c0_15 = arith.constant 0 : index
      %c0_16 = arith.constant 0 : index
      %44 = vector.load %arg5[%c0_15, %c0_16] : memref<8x128xf32, #tpu.memory_space<vmem>>, vector<8x128xf32>
      %45 = arith.addf %44, %40 : vector<8x128xf32>
      %c0_17 = arith.constant 0 : index
      %c0_18 = arith.constant 0 : index
      %46 = vector.load %arg5[%c0_17, %c0_18] : memref<8x128xf32, #tpu.memory_space<vmem>>, vector<8x128xf32>
      tpu.vector_store %arg5[%c0_17, %c0_18], %45 {strides = array<i32>} : memref<8x128xf32, #tpu.memory_space<vmem>>, vector<8x128xf32>,
      %c0_19 = arith.constant 0 : index
      %c0_20 = arith.constant 0 : index
      %47 = vector.load %arg6[%c0_19, %c0_20] : memref<8x128xf32, #tpu.memory_space<vmem>>, vector<8x128xf32>
      %48 = arith.addf %47, %43 : vector<8x128xf32>
      %c0_21 = arith.constant 0 : index
      %c0_22 = arith.constant 0 : index
      %49 = vector.load %arg6[%c0_21, %c0_22] : memref<8x128xf32, #tpu.memory_space<vmem>>, vector<8x128xf32>
      tpu.vector_store %arg6[%c0_21, %c0_22], %48 {strides = array<i32>} : memref<8x128xf32, #tpu.memory_space<vmem>>, vector<8x128xf32>,
    } else {
    }
    %c2_i32_5 = arith.constant 2 : i32
    %12 = arith.cmpi eq, %arg1, %c2_i32_5 : i32
    %13 = arith.extui %12 : i1 to i32
    %c0_i32_6 = arith.constant 0 : i32
    %14 = arith.cmpi ne, %13, %c0_i32_6 : i32
    scf.if %14 {
      %c0_7 = arith.constant 0 : index
      %c0_8 = arith.constant 0 : index
      %15 = vector.load %arg5[%c0_7, %c0_8] : memref<8x128xf32, #tpu.memory_space<vmem>>, vector<8x128xf32>
      %cst = arith.constant dense<0.000000e+00> : vector<8xf32>
      %16 = vector.multi_reduction <add>, %15, %cst [1] : vector<8x128xf32> to vector<8xf32>
      %17 = vector.shape_cast %16 : vector<8xf32> to vector<8x1xf32>
      %c0_9 = arith.constant 0 : index
      %c0_10 = arith.constant 0 : index
      %18 = vector.load %arg6[%c0_9, %c0_10] : memref<8x128xf32, #tpu.memory_space<vmem>>, vector<8x128xf32>
      %cst_11 = arith.constant dense<0.000000e+00> : vector<8xf32>
      %19 = vector.multi_reduction <add>, %18, %cst_11 [1] : vector<8x128xf32> to vector<8xf32>
      %20 = vector.shape_cast %19 : vector<8xf32> to vector<8x1xf32>
      %21 = math.log %17 : vector<8x1xf32>
      %cst_12 = arith.constant 3.000000e+01 : f32
      %22 = vector.broadcast %cst_12 : f32 to vector<8x1xf32>
      %23 = arith.addf %22, %21 : vector<8x1xf32>
      %24 = arith.subf %23, %20 : vector<8x1xf32>
      %c0_13 = arith.constant 0 : index
      %c0_14 = arith.constant 0 : index
      %25 = vector.load %arg4[%c0_13, %c0_14] : memref<8x1xf32, #tpu.memory_space<vmem>>, vector<8x1xf32>
      tpu.vector_store %arg4[%c0_13, %c0_14], %24 {strides = array<i32>} : memref<8x1xf32, #tpu.memory_space<vmem>>, vector<8x1xf32>,
    } else {
    }
    return
  }
  func.func @transform_0(%arg0: i32, %arg1: i32) -> (i32, i32) {
    %c0_i32 = arith.constant 0 : i32
    return %arg0, %arg1 : i32, i32
  }
  func.func @transform_1(%arg0: i32, %arg1: i32) -> (i32, i32) {
    %c0_i32 = arith.constant 0 : i32
    %c0_i32_0 = arith.constant 0 : i32
    return %arg0, %c0_i32 : i32, i32
  }
  func.func @transform_2(%arg0: i32, %arg1: i32) -> (i32, i32) {
    %c0_i32 = arith.constant 0 : i32
    %c0_i32_0 = arith.constant 0 : i32
    return %arg0, %c0_i32 : i32, i32
  }
}

</mosaic_0001>

<bundles_post_ra>
// kernel: tpu_custom_call.1
= control target key start
LH: loop header
LB: loop body
LE: loop exit
PB: predicated region body
PF: predicated region fallthrough
CT: control target
= control target key end

     0   :  { %7 = vsyncpa [#allocation5], 0  ;;  %s721_s0 = inlined_call_operand.hbm [shape: f32[16,300], index: 0, kind: input, shape index: {}]   ;;  %s722_s1 = inlined_call_operand.vmem [shape: s32[16,1], index: 1, kind: input, shape index: {}]   ;;  %s723_s2 = inlined_call_operand.vmem [shape: f32[16,1], index: 2, kind: output, shape index: {}]  }
   0x1   :  { %9 = vsyncpa [#allocation5 + $0x1], 0  ;;  %s586_s9 = smov 0   ;;  %s588_s10 = smov 0  }
   0x2   :  { %s590_s11 = smov 0   ;;  %s592_s12 = smov 0  }
   0x3   :  { %s594_s13 = smov 0   ;;  %s596_s14 = smov 0  }
   0x4   :  { %s598_s15 = smov 0   ;;  %s600_s16 = smov 0  }
   0x5 LB: > { %s367_s17 = sadd.s32 4294967295, %s566_s16   ;;  %s24_s18 = sadd.s32 1, %s558_s14  ;;  %s566_s16 = sphi %s600_s16, %s15_s16   ;;  %s562_s15 = sphi %s598_s15, %s732_s15   ;;  %s558_s14 = sphi %s596_s14, %s731_s14   ;;  %s554_s13 = sphi %s594_s13, %s730_s13   ;;  %s550_s12 = sphi %s592_s12, %s729_s12   ;;  %s546_s11 = sphi %s590_s11, %s728_s11   ;;  %s542_s10 = sphi %s588_s10, %s727_s10   ;;  %s538_s9 = sphi %s586_s9, %s726_s9  }
   0x6   : > { %p25_p0 = scmp.ge.s32.totalorder %s24_s18, 3  ;;  %s27_s19 = sadd.s32 1, %s562_s15 }
   0x7   : > { %s36_s20 = sadd.s32 1, %s546_s11  ;;  %p43_p1 = scmp.ne.s32.totalorder %s546_s11, %s542_s10 }
   0x8   : > { %s734_s18 = smov (%p25_p0, %s24_s18), 0  ;;  %s736_s19 = smov (!%p25_p0, %s27_s19), %s562_s15 }
   0x9   : > { %s32_s21 = ssub.s32 %s558_s14, %s734_s18  ;;  %p44_p2 = scmp.eq.s32.totalorder %s566_s16, 0 }
   0xa   : > { %p29_p3 = scmp.ge.s32.totalorder %s736_s19, 2  ;;  %p49_p4 = scmp.ne.s32.totalorder %s542_s10, %s538_s9 }
   0xb   : > { %p637_p5 = por %p44_p2, %p43_p1  ;;  %p50_p6 = scmp.eq.s32.totalorder %s367_s17, 0 }
   0xc   : > { %s738_s19 = smov (%p29_p3, %s736_s19), 0  ;;  %p394_p8 = scmp.lt.s32.totalorder %s566_s16, 6 }
   0xd   : > { %p643_p7 = por %p50_p6, %p49_p4  ;;  %s31_s24 = ssub.s32 %s562_s15, %s738_s19 }
   0xe   : > { %s33_s25 = sor.u32 %s32_s21, %s31_s24  ;;  %s125_s26 = sand.u32 1, %s546_s11  }
   0xf   : > { %p34_p9 = scmp.eq.s32.totalorder %s33_s25, 0  ;;  %s371_s27 = sshll.u32 %s125_s26, 3 }
  0x10   : > { %s387_s28 = smul.u32 3, %s562_s15  ;;  %s129_s4 = scalar_lea.vmem [#allocation4], %s371_s27 }
  0x11   : > { %s653_s29 = scalar_select %p34_p9, %s546_s11, %s36_s20  }
  0x12   : > { %s133_s30 = sadd.s32 %s558_s14, %s387_s28  ;;  %s139_s5 = sshll.u32 %s129_s4, 4  ;;  %s140_s5 = int_to_ptr.vmem [resolvable:$true] %s139_s5 }
  0x13   : > { %s372_s3 = sshll.u32 %s133_s30, 3  ;;  %p391_p10 = pnand %p394_p8, %p637_p5 }
  0x14   : > { %s135_s8 = scalar_lea.hbm %s721_s0, %s372_s3  ;;  %p373_p11 = scmp.ge.s32.totalorder %s566_s16, 1 }
  0x15   : > { %s137_s9 = sshll.u32 %s135_s8, 4  ;;  %p151_p12 = scmp.lt.s32.totalorder %s566_s16, 7  ;;  %s138_s9 = int_to_ptr.hbm [resolvable:$true] %s137_s9 }
  0x16   : > { %s126_s17 = scalar_lea.sflag [#allocation5], %s125_s26 }
  0x17   : > { %393 = dma.hbm_to_vmem [thread:$0]  (!%p391_p10), %s138_s9, 128, %s140_s5, %s126_s17  }
  0x18   : > { %p152_p13 = pnand %p373_p11, %p151_p12 }
  0x19   : > { %s157_s20 = sand.u32 (!%p152_p13), 1, %s542_s10  }
  0x1a   : > { %155 = sbr.rel (%p152_p13) target bundleno = 458 (0x1ca), region = 28  ;;  %s666_s21 = sshll.u32 (!%p152_p13), %s157_s20, 3 }
  0x1b   : > { %s158_s24 = scalar_lea.sflag (!%p152_p13), [#allocation5], %s157_s20  ;;  %s161_s25 = scalar_lea.vmem (!%p152_p13), [#allocation4], %s666_s21 }
  0x1f   : > { %533 = dma.done.wait (%p643_p7), %s158_s24, 128  }
  0x20   : > { %535 = vsyncadd (%p643_p7), %s158_s24, 4294967168  ;;  %p186_p0 = scmp.lt.s32.totalorder %s554_s13, 1  ;;  %p377_p1 = scmp.ne.s32.totalorder %s550_s12, 0 }
  0x22   : > { %s740_s13 = smov (!%p186_p0, %s554_s13), 1  ;;  %197 = sbr.rel (%p377_p1) target bundleno = 42 (0x2a), region = 36 }
  0x23   : > { %s375_s22 = sshll.u32 %s740_s13, 3 }
  0x24   : > { %s189_s28 = scalar_lea.vmem %s722_s1, %s375_s22  ;;  %s681_s4 = scalar_lea.vmem %s723_s2, %s375_s22 }
  0x27   : > { %v568_v0 = vmov 0.0  }
  0x28   : > { %198 = vst [vmem:[#allocation2] sm:$0xff] %v568_v0 }
  0x29   : > { %199 = vst [vmem:[#allocation3] sm:$0xff] %v568_v0 }
  0x2a PF: > { %v200_v1 = vld [vmem:[%s189_s28] sm:$0xff]  ;;  %v201_v2 = vlaneseq  ;;  %s685_s13 = sshll.u32 %s550_s12, 7  ;;  %p379_p2 = scmp.ge.s32.totalorder %s550_s12, 2 }
  0x2c   : > { %v202_v3 = vand.u32 127, %v201_v2  ;;  %207 = sbr.rel (%p379_p2) target bundleno = 185 (0xb9), region = 40 }
  0x31   : > { %v208_v4 = vstv %s685_s13  ;;  %v569_v5 = vmov 0   ;;  %v210_v7 = vld [vmem:[%s161_s25] sm:$0xff]  ;;  %v229_v11 = vld [vmem:[#allocation3] sm:$0xff]  ;;  %v226_v17 = vld [vmem:[#allocation2] sm:$0xff] }
  0x32   : > { %462 = vset.pattern.permute.xlu0 %v569_v5  ;;  %v209_v6 = vsub.s32 %v200_v1, %v208_v4  ;;  %v380_v8 = vadd.f32 -0.3, %v210_v7 }
  0x34   : > { %214 = vperm.xlu0 %462, %v209_v6  }
  0xa6   : > { %v215_v9 = vpop.permute.xlu0 %214 }
  0xa7   : > { %vm216_vm0 = vcmp.eq.s32.totalorder %v202_v3, %v215_v9 }
  0xa8   : > { %v218_v10 = vsel %vm216_vm0, %v380_v8, %v210_v7 }
  0xa9   : > { %v219_v12 = vmul.f32 30.0, %v218_v10 }
  0xab   : > { %v381_v13 = vadd.f32 -30.0, %v219_v12  ;;  %v224_v14 = vsel %vm216_vm0, %v219_v12, 0.0 }
  0xac   : > { %v230_v15 = vadd.f32 %v229_v11, %v224_v14 }
  0xad   : > { %v221_v16 = vmul.f32 1.442695, %v381_v13 }
  0xae   : > { %231 = vst [vmem:[#allocation3] sm:$0xff] %v230_v15 }
  0xaf   : > { %463 = vpow2.f32 %v221_v16 }
  0xb5   : > { %v464_v18 = vpop.eup %463 }
  0xb6   : > { %v227_v19 = vadd.f32 %v464_v18, %v226_v17 }
  0xb8   : > { %228 = vst [vmem:[#allocation2] sm:$0xff] %v227_v19 }
  0xb9 PF: > { %p382_p3 = scmp.ne.s32.totalorder %s550_s12, 2 }
  0xba   : > { %s238_s23 = ssub.s32 (!%p382_p3), 300, %s685_s13 }
  0xbb   : > { %235 = sbr.rel (%p382_p3) target bundleno = 458 (0x1ca), region = 44 }
  0xc0   : > { %v236_v20 = vstv %s685_s13  ;;  %v570_v21 = vmov 0   ;;  %v239_v23 = vld [vmem:[%s161_s25] sm:$0xff]  ;;  %v250_v25 = vstv %s238_s23  ;;  %v262_v29 = vld [vmem:[#allocation3] sm:$0xff]  ;;  %v259_v35 = vld [vmem:[#allocation2] sm:$0xff]  ;;  %vm275_vm3 = vcmask 7168  }
  0xc1   : > { %465 = vset.pattern.permute.xlu0 %v570_v21  ;;  %v237_v22 = vsub.s32 %v200_v1, %v236_v20  ;;  %v383_v24 = vadd.f32 -0.3, %v239_v23  ;;  %vm251_vm2 = vcmp.lt.s32.totalorder %v202_v3, %v250_v25 }
  0xc3   : > { %243 = vperm.xlu0 %465, %v237_v22  }
 0x135   : > { %v244_v26 = vpop.permute.xlu0 %243 }
 0x136   : > { %vm245_vm1 = vcmp.eq.s32.totalorder %v202_v3, %v244_v26 }
 0x137   : > { %v247_v27 = vsel %vm245_vm1, %v383_v24, %v239_v23 }
 0x138   : > { %v248_v28 = vmul.f32 30.0, %v247_v27 }
 0x13a   : > { %v252_v30 = vsel %vm251_vm2, %v248_v28, -1e+30 }
 0x13b   : > { %v384_v31 = vadd.f32 -30.0, %v252_v30  ;;  %v257_v32 = vsel %vm245_vm1, %v252_v30, 0.0 }
 0x13c   : > { %v263_v33 = vadd.f32 %v262_v29, %v257_v32 }
 0x13d   : > { %v254_v34 = vmul.f32 1.442695, %v384_v31 }
 0x13e   : > { %264 = vst [vmem:[#allocation3] sm:$0xff] %v263_v33  ;;  %269 = vadd.xlane.f32.xlu1 %v263_v33 }
 0x13f   : > { %466 = vpow2.f32 %v254_v34 }
 0x145   : > { %v467_v36 = vpop.eup %466 }
 0x146   : > { %v260_v37 = vadd.f32 %v467_v36, %v259_v35 }
 0x148   : > { %261 = vst [vmem:[#allocation2] sm:$0xff] %v260_v37  ;;  %266 = vadd.xlane.f32.xlu0 %v260_v37 }
 0x1b1   : > { %v270_v42 = vpop.xlane.xlu1 %269 }
 0x1bb   : > { %v267_v38 = vpop.xlane.xlu0 %266 }
 0x1bc   : > { %468 = vlog2.f32 %v267_v38 }
 0x1c2   : > { %v469_v39 = vpop.eup %468 }
 0x1c3   : > { %v272_v40 = vmul.f32 0.6931472, %v469_v39 }
 0x1c5   : > { %v273_v41 = vadd.f32 30.0, %v272_v40 }
 0x1c7   : > { %v274_v43 = vsub.f32 %v273_v41, %v270_v42 }
 0x1c9   : > { %276 = vst.msk [vmem:[%s681_s4] sm:$0xff] %vm275_vm3, %v274_v43 }
 0x1ca PF: > { %s15_s16 = sadd.s32 1, %s566_s16   ;;  %s726_s9 = smov %s542_s10 }
 0x1cb   : > { %p12_p4 = scmp.ge.s32.totalorder %s15_s16, 8   ;;  %s727_s10 = smov %s546_s11 }
 0x1cc   : > { %s728_s11 = smov %s653_s29  ;;  %s729_s12 = smov %s558_s14 }
 0x1cd   : > { %s730_s13 = smov %s562_s15  ;;  %s731_s14 = smov %s734_s18 }
 0x1ce   : > { %s732_s15 = smov %s738_s19  ;;  %14 = sbr.rel (!%p12_p4) target bundleno = 5 (0x5), region = 83 }
 0x1d3   :  { %296 = vsyncpa [#allocation5], 1 }
 0x1d4   :  { %298 = vsyncpa [#allocation5 + $0x1], 1 }

</bundles_post_ra>
